<compile_context>
chip_gen: v7x
topology: tpu7x:2x2x1
jax: 0.10.0
libtpu: 0.0.40
codegen_flags: <defaults>
</compile_context>

<pallas_src>
import functools

import numpy as np
import jax
import jax.numpy as jnp
from jax import lax
from jax.experimental import pallas as pl
from jax.experimental.pallas import tpu as pltpu

try:  # prefer scipy's C implementation for the host-side matcher
    from scipy.optimize import linear_sum_assignment as _scipy_lsa
except Exception:  # pragma: no cover - sandbox may not ship scipy
    _scipy_lsa = None

_TB = 8                      # targets downsampled per grid step
_LANE = 128                  # lane width / cost-matrix column padding unit
_VMEM_LIMIT = 48 * 1024 * 1024  # above v5e(16MB)/v6e(32MB) defaults, below v7x physical


def _round_up(x, m):
    return ((x + m - 1) // m) * m


def _q_tiling(q):
    """(tile, padded Q) for the Q axis of the cost kernel."""
    if q <= _LANE:
        tq = _round_up(q, 8)
        return tq, tq
    return _LANE, _round_up(q, _LANE)


# ---------------------------------------------------------------------------
# Bilinear interpolation matrix (F.interpolate, bilinear, align_corners=False)
# ---------------------------------------------------------------------------
def _bilinear_matrix(out_size, in_size):
    o = np.arange(out_size, dtype=np.float64)
    x = (o + 0.5) * (in_size / out_size) - 0.5
    x0 = np.floor(x).astype(np.int64)
    frac = x - x0
    x0c = np.clip(x0, 0, in_size - 1)
    x1c = np.clip(x0 + 1, 0, in_size - 1)
    w = np.zeros((out_size, in_size), dtype=np.float32)
    for i in range(out_size):
        w[i, x0c[i]] += 1.0 - frac[i]
        w[i, x1c[i]] += frac[i]
    return w  # rows sum to 1


# ---------------------------------------------------------------------------
# Kernel A: batched target downsample -> padded, MXU-ready target buffer.
#   grid step i handles targets [i*TB, (i+1)*TB); per step:
#     pass 1: one matmul [TB*H, W] @ [W, Ws]          (targets stacked on M)
#     pass 2: TB unrolled matmuls [Hs, H] @ [H, Ws]
#   the last padded row (global index t_bkt-1) is overwritten with wsum so the
#   cost kernel's single matmul also yields b1 = sum(up(m_q)).
# ---------------------------------------------------------------------------
def _prepare_kernel(tgt_ref, wrT_ref, wc_ref, wsum_ref, td_ref, *, tb, h):
    p1 = jnp.dot(tgt_ref[...], wc_ref[...],
                 preferred_element_type=jnp.float32)          # [TB*H, Ws]
    p1 = p1.astype(jnp.bfloat16)
    wrT = wrT_ref[...]                                        # [Hs, H]
    for t in range(tb):                                       # unrolled, tb=8
        td_t = jnp.dot(wrT, p1[t * h:(t + 1) * h, :],
                       preferred_element_type=jnp.float32)    # [Hs, Ws]
        td_ref[t] = td_t.astype(jnp.bfloat16)

    # stash the b1 weight image in the spare padded row (row t_bkt-1 >= T).
    @pl.when(pl.program_id(0) == pl.num_programs(0) - 1)
    def _():
        td_ref[tb - 1] = wsum_ref[...]


# ---------------------------------------------------------------------------
# Kernel B: mask matching cost, tiled over Q, lane-dense [tq, TPAD] output.
#   C = 1 - (2*M@TD^T + 1) / (b1 + b2 + 1);   b1 comes out of the same matmul
#   (wsum row of TD), b2 is a tiny M=1 matmul.  Invalid / stale columns are
#   laundered to 1.0 with jnp.where.
# ---------------------------------------------------------------------------
def _cost_kernel(m_ref, td_ref, valid_ref, c_ref, *, b1_col):
    m = m_ref[...]                                            # [tq, HsWs] bf16
    td = td_ref[...]                                          # [TPAD, HsWs] bf16
    raw = lax.dot_general(m, td, (((1,), (1,)), ((), ())),
                          preferred_element_type=jnp.float32)  # [tq, TPAD]
    b1 = raw[:, b1_col:b1_col + 1]                            # [tq, 1]
    ones_row = jnp.ones((1, td.shape[1]), jnp.bfloat16)
    b2 = lax.dot_general(ones_row, td, (((1,), (1,)), ((), ())),
                         preferred_element_type=jnp.float32)  # [1, TPAD]
    cost = 1.0 - (2.0 * raw + 1.0) / (b1 + b2 + 1.0)
    c_ref[...] = jnp.where(valid_ref[...] > 0.0, cost, 1.0)


# ---------------------------------------------------------------------------
# Kernel C: fused weighted cross-entropy + dice loss (dice == matched cost).
#   All inputs are dense f32 matrices (one-hot target classes, match matrix),
#   so there are no integer gathers and no (N,1) masked-load blocks.
# ---------------------------------------------------------------------------
def _losses_kernel(x_ref, oh_ref, w_ref, c_ref, s_ref, invp_ref, o_ref):
    x = x_ref[...]                                            # [Qp, C1]
    oh = oh_ref[...]                                          # [Qp, C1] one-hot (0 rows for padded q)
    w = w_ref[...]                                            # [1, C1]
    mx = jnp.max(x, axis=1, keepdims=True)
    lse = mx + jnp.log(jnp.sum(jnp.exp(x - mx), axis=1, keepdims=True))
    picked = jnp.sum(oh * x, axis=1, keepdims=True)
    wt = jnp.sum(oh * w, axis=1, keepdims=True)
    loss_cls = (jnp.sum(wt * (lse - picked), keepdims=True)
                / jnp.sum(wt, keepdims=True))                 # [1, 1]

    loss_mask = jnp.sum(c_ref[...] * s_ref[...], keepdims=True) * invp_ref[...]

    lane = lax.broadcasted_iota(jnp.int32, (1, _LANE), 1)
    o_ref[...] = (loss_cls * (lane == 0).astype(jnp.float32)
                  + loss_mask * (lane == 1).astype(jnp.float32))


# ---------------------------------------------------------------------------
# Jitted device segments
# ---------------------------------------------------------------------------
@jax.jit
def _prematch_cost(pred_mask, tgt_mask, wrT, wc, wsum2d, valid_row):
    """pred_mask [Q,Hs,Ws], tgt_mask [T,H,W] -> cost [Q_pad, TPAD] f32."""
    q, hs, ws = pred_mask.shape
    t, h, w = tgt_mask.shape
    tpad = valid_row.shape[1]
    t_bkt = _round_up(t + 1, _TB)            # +1 reserves a row for wsum
    tq, q_pad = _q_tiling(q)
    hw = hs * ws

    m_flat = pred_mask.astype(jnp.bfloat16).reshape(q, hw)
    m_flat = jnp.pad(m_flat, ((0, q_pad - q), (0, 0)))
    tgt_pad = jnp.pad(tgt_mask.astype(jnp.bfloat16),
                      ((0, t_bkt - t), (0, 0), (0, 0)))
    tgt_2d = tgt_pad.reshape(t_bkt * h, w)   # free, contiguous reshape

    td3 = pl.pallas_call(
        functools.partial(_prepare_kernel, tb=_TB, h=h),
        out_shape=jax.ShapeDtypeStruct((tpad, hs, ws), jnp.bfloat16),
        grid=(t_bkt // _TB,),
        in_specs=[pl.BlockSpec((_TB * h, w), lambda i: (i, 0)),
                  pl.BlockSpec((hs, h), lambda i: (0, 0)),
                  pl.BlockSpec((w, ws), lambda i: (0, 0)),
                  pl.BlockSpec((hs, ws), lambda i: (0, 0))],
        out_specs=pl.BlockSpec((_TB, hs, ws), lambda i: (i, 0, 0)),
        compiler_params=pltpu.CompilerParams(
            dimension_semantics=("parallel",),
            vmem_limit_bytes=_VMEM_LIMIT),
    )(tgt_2d, wrT, wc, wsum2d)

    td = td3.reshape(tpad, hw)               # free, contiguous reshape

    cost = pl.pallas_call(
        functools.partial(_cost_kernel, b1_col=t_bkt - 1),
        out_shape=jax.ShapeDtypeStruct((q_pad, tpad), jnp.float32),
        grid=(q_pad // tq,),
        in_specs=[pl.BlockSpec((tq, hw), lambda i: (i, 0)),
                  pl.BlockSpec((tpad, hw), lambda i: (0, 0)),
                  pl.BlockSpec((1, tpad), lambda i: (0, 0))],
        out_specs=pl.BlockSpec((tq, tpad), lambda i: (i, 0)),
        compiler_params=pltpu.CompilerParams(
            dimension_semantics=("parallel",),
            vmem_limit_bytes=_VMEM_LIMIT),
    )(m_flat, td, valid_row)
    return cost


@jax.jit
def _postmatch_losses(pred_cls, onehot, class_w, cost, smatch, inv_pairs):
    q, c1 = pred_cls.shape
    q_pad, tpad = cost.shape
    x = jnp.pad(pred_cls.astype(jnp.float32), ((0, q_pad - q), (0, 0)))
    return pl.pallas_call(
        _losses_kernel,
        out_shape=jax.ShapeDtypeStruct((1, _LANE), jnp.float32),
        grid=(1,),
        in_specs=[pl.BlockSpec((q_pad, c1), lambda i: (0, 0)),
                  pl.BlockSpec((q_pad, c1), lambda i: (0, 0)),
                  pl.BlockSpec((1, c1), lambda i: (0, 0)),
                  pl.BlockSpec((q_pad, tpad), lambda i: (0, 0)),
                  pl.BlockSpec((q_pad, tpad), lambda i: (0, 0)),
                  pl.BlockSpec((1, 1), lambda i: (0, 0))],
        out_specs=pl.BlockSpec((1, _LANE), lambda i: (0, 0)),
    )(x, onehot, class_w, cost, smatch, inv_pairs)


# ---------------------------------------------------------------------------
# Hungarian assignment (host): scipy when available, else pure-Python fallback.
# ---------------------------------------------------------------------------
def _linear_sum_assignment(cost):
    if _scipy_lsa is not None:
        rows, cols = _scipy_lsa(np.asarray(cost, dtype=np.float64))
        return np.asarray(rows, np.int64), np.asarray(cols, np.int64)

    cost = np.asarray(cost, dtype=np.float64)
    transposed = cost.shape[0] > cost.shape[1]
    if transposed:
        cost = cost.T
    n, m = cost.shape
    INF = float("inf")
    u = [0.0] * (n + 1)
    v = [0.0] * (m + 1)
    p = [0] * (m + 1)
    way = [0] * (m + 1)
    for i in range(1, n + 1):
        p[0] = i
        j0 = 0
        minv = [INF] * (m + 1)
        used = [False] * (m + 1)
        while True:
            used[j0] = True
            i0 = p[j0]
            delta = INF
            j1 = 0
            for j in range(1, m + 1):
                if not used[j]:
                    cur = cost[i0 - 1][j - 1] - u[i0] - v[j]
                    if cur < minv[j]:
                        minv[j] = cur
                        way[j] = j0
                    if minv[j] < delta:
                        delta = minv[j]
                        j1 = j
            for j in range(m + 1):
                if used[j]:
                    u[p[j]] += delta
                    v[j] -= delta
                else:
                    minv[j] -= delta
            j0 = j1
            if p[j0] == 0:
                break
        while True:
            j1 = way[j0]
            p[j0] = p[j1]
            j0 = j1
            if j0 == 0:
                break
    rows, cols = [], []
    for j in range(1, m + 1):
        if p[j] != 0:
            rows.append(p[j] - 1)
            cols.append(j - 1)
    rows = np.asarray(rows, dtype=np.int64)
    cols = np.asarray(cols, dtype=np.int64)
    if transposed:
        rows, cols = cols, rows
    order = np.argsort(rows)
    return rows[order], cols[order]


# ---------------------------------------------------------------------------
# SetCriterion (JAX / Pallas version)
# ---------------------------------------------------------------------------
class SetCriterionPallas:
    def __init__(self, num_classes, weight_dict, eos_coef):
        self.num_classes = num_classes
        self.weight_dict = weight_dict
        self.eos_coef = eos_coef
        w = np.ones(num_classes + 1, dtype=np.float32)
        w[-1] = eos_coef
        self.empty_weight = jnp.asarray(w).reshape(1, num_classes + 1)
        self._const_cache = {}

    def _constants(self, H, W, Hs, Ws, T):
        key = (H, W, Hs, Ws, T)
        if key not in self._const_cache:
            Wr = _bilinear_matrix(H, Hs)                       # [H, Hs]
            Wc = _bilinear_matrix(W, Ws)                       # [W, Ws]
            tpad = _round_up(_round_up(T + 1, _TB), _LANE)     # handles T > 128
            wrT = jnp.asarray(Wr.T, dtype=jnp.bfloat16)        # [Hs, H]
            wc = jnp.asarray(Wc, dtype=jnp.bfloat16)           # [W, Ws]
            wsum = jnp.asarray(np.outer(Wr.sum(0), Wc.sum(0)), dtype=jnp.bfloat16)
            valid = (np.arange(tpad) < T).astype(np.float32).reshape(1, tpad)
            self._const_cache[key] = (wrT, wc, wsum, jnp.asarray(valid), tpad)
        return self._const_cache[key]

    def forward(self, output, target):
        pred_cls = output["pred_cls"][0]                       # [Q, C+1]
        pred_mask = output["pred_mask"]                        # [Q, Hs, Ws]
        tgt_mask = target["mask"][0]                           # [T, H, W]
        Q, Hs, Ws = pred_mask.shape
        T, H, W = tgt_mask.shape
        C1 = self.num_classes + 1
        _, q_pad = _q_tiling(Q)

        if T > 0:
            wrT, wc, wsum2d, valid_row, tpad = self._constants(H, W, Hs, Ws, T)
            cost = _prematch_cost(pred_mask, tgt_mask, wrT, wc, wsum2d, valid_row)
            # ---- single host sync: cost matrix + target classes for matching ----
            cost_host, tgt_cls_host = jax.device_get((cost, target["cls"][0]))
            src, tgt = _linear_sum_assignment(np.asarray(cost_host)[:Q, :T])
            tgt_cls_host = np.asarray(tgt_cls_host)
        else:  # no targets: only the (all no-object) classification loss remains
            tpad = _LANE
            cost = jnp.ones((q_pad, tpad), jnp.float32)
            src = np.zeros((0,), np.int64)
            tgt = np.zeros((0,), np.int64)
            tgt_cls_host = np.zeros((0,), np.int64)

        # ---- tiny host-side assembly of dense selection matrices ----
        target_cls = np.full((Q,), self.num_classes, dtype=np.int64)
        if src.size:
            target_cls[src] = tgt_cls_host[tgt].astype(np.int64)
        onehot = np.zeros((q_pad, C1), np.float32)
        onehot[np.arange(Q), target_cls] = 1.0
        smatch = np.zeros((q_pad, tpad), np.float32)
        if src.size:
            smatch[src, tgt] = 1.0
        inv_pairs = np.full((1, 1), 1.0 / max(1, int(src.size)), np.float32)

        out = _postmatch_losses(pred_cls, jnp.asarray(onehot), self.empty_weight,
                                cost, jnp.asarray(smatch), jnp.asarray(inv_pairs))
        # NOTE: the PyTorch reference also computes cost_cls but never uses it.
        return {"loss_cls": out[0, 0], "loss_mask": out[0, 1]}


if __name__ == "__main__":
    key = jax.random.PRNGKey(0)
    B, Q, num_classes, T = 1, 8, 4, 3          # batch, queries, classes (w/o no-object), targets
    Hs, Ws, H, W = 8, 8, 16, 16                # pred-mask resolution, target-mask resolution

    k1, k2, k3 = jax.random.split(key, 3)
    pred_cls = jax.random.normal(k1, (B, Q, num_classes + 1), jnp.float32)
    pred_mask = jax.nn.sigmoid(jax.random.normal(k2, (Q, Hs, Ws), jnp.float32))
    tgt_cls = jax.random.randint(k3, (B, T), 0, num_classes)

    tm = np.zeros((B, T, H, W), dtype=np.float32)
    tm[0, 0, 2:8, 2:8] = 1.0
    tm[0, 1, 6:14, 4:12] = 1.0
    tm[0, 2, 0:5, 10:16] = 1.0
    target_mask = jnp.asarray(tm)

    criterion = SetCriterionPallas(num_classes,
                                   weight_dict={"loss_cls": 1.0, "loss_mask": 1.0},
                                   eos_coef=0.1)
    losses = criterion.forward({"pred_cls": pred_cls, "pred_mask": pred_mask},
                               {"cls": tgt_cls, "mask": target_mask})
    jax.block_until_ready(losses["loss_cls"])
    jax.block_until_ready(losses["loss_mask"])
    print("KERNEL_OK")
</pallas_src>

<mosaic_0001>
module attributes {stable_mosaic.version = 11 : i64} {
  func.func @_prepare_kernel(%arg0: i32, %arg1: memref<128x16xbf16, #tpu.memory_space<vmem>>, %arg2: memref<8x16xbf16, #tpu.memory_space<vmem>>, %arg3: memref<16x8xbf16, #tpu.memory_space<vmem>>, %arg4: memref<8x8xbf16, #tpu.memory_space<vmem>>, %arg5: memref<8x8x8xbf16, #tpu.memory_space<vmem>>) attributes {dimension_semantics = [#tpu.dimension_semantics<parallel>], iteration_bounds = array<i64: 1>, scalar_prefetch = 0 : i64, scratch_operands = 0 : i64, tpu.core_type = #tpu.core_type<tc>, window_params = [{transform_indices = @transform_0, window_bounds = array<i64: 128, 16>}, {pipeline_mode = #tpu.pipeline_mode<synchronous>, transform_indices = @transform_1, window_bounds = array<i64: 8, 16>}, {pipeline_mode = #tpu.pipeline_mode<synchronous>, transform_indices = @transform_2, window_bounds = array<i64: 16, 8>}, {pipeline_mode = #tpu.pipeline_mode<synchronous>, transform_indices = @transform_3, window_bounds = array<i64: 8, 8>}, {transform_indices = @transform_4, window_bounds = array<i64: 8, 8, 8>}]} {
    %c0 = arith.constant 0 : index
    %c0_0 = arith.constant 0 : index
    %0 = vector.load %arg1[%c0, %c0_0] : memref<128x16xbf16, #tpu.memory_space<vmem>>, vector<128x16xbf16>
    %c0_1 = arith.constant 0 : index
    %c0_2 = arith.constant 0 : index
    %1 = vector.load %arg3[%c0_1, %c0_2] : memref<16x8xbf16, #tpu.memory_space<vmem>>, vector<16x8xbf16>
    %cst = arith.constant dense<0.000000e+00> : vector<128x8xf32>
    %2 = tpu.matmul %0, %1, %cst {dimension_numbers = #tpu.dot_dimension_numbers<[1], [0], [0], [1], [0, 0, 1, 1], [], []>} : vector<128x16xbf16>, vector<16x8xbf16>, vector<128x8xf32> -> vector<128x8xf32>
    %3 = arith.truncf %2 : vector<128x8xf32> to vector<128x8xbf16>
    %c0_3 = arith.constant 0 : index
    %c0_4 = arith.constant 0 : index
    %4 = vector.load %arg2[%c0_3, %c0_4] : memref<8x16xbf16, #tpu.memory_space<vmem>>, vector<8x16xbf16>
    %5 = vector.extract_strided_slice %3 {offsets = [0, 0], sizes = [16, 8], strides = [1, 1]} : vector<128x8xbf16> to vector<16x8xbf16>
    %cst_5 = arith.constant dense<0.000000e+00> : vector<8x8xf32>
    %6 = tpu.matmul %4, %5, %cst_5 {dimension_numbers = #tpu.dot_dimension_numbers<[1], [0], [0], [1], [0, 0, 1, 1], [], []>} : vector<8x16xbf16>, vector<16x8xbf16>, vector<8x8xf32> -> vector<8x8xf32>
    %7 = arith.truncf %6 : vector<8x8xf32> to vector<8x8xbf16>
    %c0_6 = arith.constant 0 : index
    %c0_7 = arith.constant 0 : index
    %c0_8 = arith.constant 0 : index
    %8 = vector.load %arg5[%c0_6, %c0_7, %c0_8] : memref<8x8x8xbf16, #tpu.memory_space<vmem>>, vector<1x8x8xbf16>
    %9 = vector.shape_cast %8 : vector<1x8x8xbf16> to vector<8x8xbf16>
    %10 = vector.shape_cast %7 : vector<8x8xbf16> to vector<1x8x8xbf16>
    tpu.vector_store %arg5[%c0_6, %c0_7, %c0_8], %10 {strides = array<i32>} : memref<8x8x8xbf16, #tpu.memory_space<vmem>>, vector<1x8x8xbf16>,
    %11 = vector.extract_strided_slice %3 {offsets = [16, 0], sizes = [16, 8], strides = [1, 1]} : vector<128x8xbf16> to vector<16x8xbf16>
    %cst_9 = arith.constant dense<0.000000e+00> : vector<8x8xf32>
    %12 = tpu.matmul %4, %11, %cst_9 {dimension_numbers = #tpu.dot_dimension_numbers<[1], [0], [0], [1], [0, 0, 1, 1], [], []>} : vector<8x16xbf16>, vector<16x8xbf16>, vector<8x8xf32> -> vector<8x8xf32>
    %13 = arith.truncf %12 : vector<8x8xf32> to vector<8x8xbf16>
    %c1 = arith.constant 1 : index
    %c0_10 = arith.constant 0 : index
    %c0_11 = arith.constant 0 : index
    %14 = vector.load %arg5[%c1, %c0_10, %c0_11] : memref<8x8x8xbf16, #tpu.memory_space<vmem>>, vector<1x8x8xbf16>
    %15 = vector.shape_cast %14 : vector<1x8x8xbf16> to vector<8x8xbf16>
    %16 = vector.shape_cast %13 : vector<8x8xbf16> to vector<1x8x8xbf16>
    tpu.vector_store %arg5[%c1, %c0_10, %c0_11], %16 {strides = array<i32>} : memref<8x8x8xbf16, #tpu.memory_space<vmem>>, vector<1x8x8xbf16>,
    %17 = vector.extract_strided_slice %3 {offsets = [32, 0], sizes = [16, 8], strides = [1, 1]} : vector<128x8xbf16> to vector<16x8xbf16>
    %cst_12 = arith.constant dense<0.000000e+00> : vector<8x8xf32>
    %18 = tpu.matmul %4, %17, %cst_12 {dimension_numbers = #tpu.dot_dimension_numbers<[1], [0], [0], [1], [0, 0, 1, 1], [], []>} : vector<8x16xbf16>, vector<16x8xbf16>, vector<8x8xf32> -> vector<8x8xf32>
    %19 = arith.truncf %18 : vector<8x8xf32> to vector<8x8xbf16>
    %c2 = arith.constant 2 : index
    %c0_13 = arith.constant 0 : index
    %c0_14 = arith.constant 0 : index
    %20 = vector.load %arg5[%c2, %c0_13, %c0_14] : memref<8x8x8xbf16, #tpu.memory_space<vmem>>, vector<1x8x8xbf16>
    %21 = vector.shape_cast %20 : vector<1x8x8xbf16> to vector<8x8xbf16>
    %22 = vector.shape_cast %19 : vector<8x8xbf16> to vector<1x8x8xbf16>
    tpu.vector_store %arg5[%c2, %c0_13, %c0_14], %22 {strides = array<i32>} : memref<8x8x8xbf16, #tpu.memory_space<vmem>>, vector<1x8x8xbf16>,
    %23 = vector.extract_strided_slice %3 {offsets = [48, 0], sizes = [16, 8], strides = [1, 1]} : vector<128x8xbf16> to vector<16x8xbf16>
    %cst_15 = arith.constant dense<0.000000e+00> : vector<8x8xf32>
    %24 = tpu.matmul %4, %23, %cst_15 {dimension_numbers = #tpu.dot_dimension_numbers<[1], [0], [0], [1], [0, 0, 1, 1], [], []>} : vector<8x16xbf16>, vector<16x8xbf16>, vector<8x8xf32> -> vector<8x8xf32>
    %25 = arith.truncf %24 : vector<8x8xf32> to vector<8x8xbf16>
    %c3 = arith.constant 3 : index
    %c0_16 = arith.constant 0 : index
    %c0_17 = arith.constant 0 : index
    %26 = vector.load %arg5[%c3, %c0_16, %c0_17] : memref<8x8x8xbf16, #tpu.memory_space<vmem>>, vector<1x8x8xbf16>
    %27 = vector.shape_cast %26 : vector<1x8x8xbf16> to vector<8x8xbf16>
    %28 = vector.shape_cast %25 : vector<8x8xbf16> to vector<1x8x8xbf16>
    tpu.vector_store %arg5[%c3, %c0_16, %c0_17], %28 {strides = array<i32>} : memref<8x8x8xbf16, #tpu.memory_space<vmem>>, vector<1x8x8xbf16>,
    %29 = vector.extract_strided_slice %3 {offsets = [64, 0], sizes = [16, 8], strides = [1, 1]} : vector<128x8xbf16> to vector<16x8xbf16>
    %cst_18 = arith.constant dense<0.000000e+00> : vector<8x8xf32>
    %30 = tpu.matmul %4, %29, %cst_18 {dimension_numbers = #tpu.dot_dimension_numbers<[1], [0], [0], [1], [0, 0, 1, 1], [], []>} : vector<8x16xbf16>, vector<16x8xbf16>, vector<8x8xf32> -> vector<8x8xf32>
    %31 = arith.truncf %30 : vector<8x8xf32> to vector<8x8xbf16>
    %c4 = arith.constant 4 : index
    %c0_19 = arith.constant 0 : index
    %c0_20 = arith.constant 0 : index
    %32 = vector.load %arg5[%c4, %c0_19, %c0_20] : memref<8x8x8xbf16, #tpu.memory_space<vmem>>, vector<1x8x8xbf16>
    %33 = vector.shape_cast %32 : vector<1x8x8xbf16> to vector<8x8xbf16>
    %34 = vector.shape_cast %31 : vector<8x8xbf16> to vector<1x8x8xbf16>
    tpu.vector_store %arg5[%c4, %c0_19, %c0_20], %34 {strides = array<i32>} : memref<8x8x8xbf16, #tpu.memory_space<vmem>>, vector<1x8x8xbf16>,
    %35 = vector.extract_strided_slice %3 {offsets = [80, 0], sizes = [16, 8], strides = [1, 1]} : vector<128x8xbf16> to vector<16x8xbf16>
    %cst_21 = arith.constant dense<0.000000e+00> : vector<8x8xf32>
    %36 = tpu.matmul %4, %35, %cst_21 {dimension_numbers = #tpu.dot_dimension_numbers<[1], [0], [0], [1], [0, 0, 1, 1], [], []>} : vector<8x16xbf16>, vector<16x8xbf16>, vector<8x8xf32> -> vector<8x8xf32>
    %37 = arith.truncf %36 : vector<8x8xf32> to vector<8x8xbf16>
    %c5 = arith.constant 5 : index
    %c0_22 = arith.constant 0 : index
    %c0_23 = arith.constant 0 : index
    %38 = vector.load %arg5[%c5, %c0_22, %c0_23] : memref<8x8x8xbf16, #tpu.memory_space<vmem>>, vector<1x8x8xbf16>
    %39 = vector.shape_cast %38 : vector<1x8x8xbf16> to vector<8x8xbf16>
    %40 = vector.shape_cast %37 : vector<8x8xbf16> to vector<1x8x8xbf16>
    tpu.vector_store %arg5[%c5, %c0_22, %c0_23], %40 {strides = array<i32>} : memref<8x8x8xbf16, #tpu.memory_space<vmem>>, vector<1x8x8xbf16>,
    %41 = vector.extract_strided_slice %3 {offsets = [96, 0], sizes = [16, 8], strides = [1, 1]} : vector<128x8xbf16> to vector<16x8xbf16>
    %cst_24 = arith.constant dense<0.000000e+00> : vector<8x8xf32>
    %42 = tpu.matmul %4, %41, %cst_24 {dimension_numbers = #tpu.dot_dimension_numbers<[1], [0], [0], [1], [0, 0, 1, 1], [], []>} : vector<8x16xbf16>, vector<16x8xbf16>, vector<8x8xf32> -> vector<8x8xf32>
    %43 = arith.truncf %42 : vector<8x8xf32> to vector<8x8xbf16>
    %c6 = arith.constant 6 : index
    %c0_25 = arith.constant 0 : index
    %c0_26 = arith.constant 0 : index
    %44 = vector.load %arg5[%c6, %c0_25, %c0_26] : memref<8x8x8xbf16, #tpu.memory_space<vmem>>, vector<1x8x8xbf16>
    %45 = vector.shape_cast %44 : vector<1x8x8xbf16> to vector<8x8xbf16>
    %46 = vector.shape_cast %43 : vector<8x8xbf16> to vector<1x8x8xbf16>
    tpu.vector_store %arg5[%c6, %c0_25, %c0_26], %46 {strides = array<i32>} : memref<8x8x8xbf16, #tpu.memory_space<vmem>>, vector<1x8x8xbf16>,
    %47 = vector.extract_strided_slice %3 {offsets = [112, 0], sizes = [16, 8], strides = [1, 1]} : vector<128x8xbf16> to vector<16x8xbf16>
    %cst_27 = arith.constant dense<0.000000e+00> : vector<8x8xf32>
    %48 = tpu.matmul %4, %47, %cst_27 {dimension_numbers = #tpu.dot_dimension_numbers<[1], [0], [0], [1], [0, 0, 1, 1], [], []>} : vector<8x16xbf16>, vector<16x8xbf16>, vector<8x8xf32> -> vector<8x8xf32>
    %49 = arith.truncf %48 : vector<8x8xf32> to vector<8x8xbf16>
    %c7 = arith.constant 7 : index
    %c0_28 = arith.constant 0 : index
    %c0_29 = arith.constant 0 : index
    %50 = vector.load %arg5[%c7, %c0_28, %c0_29] : memref<8x8x8xbf16, #tpu.memory_space<vmem>>, vector<1x8x8xbf16>
    %51 = vector.shape_cast %50 : vector<1x8x8xbf16> to vector<8x8xbf16>
    %52 = vector.shape_cast %49 : vector<8x8xbf16> to vector<1x8x8xbf16>
    tpu.vector_store %arg5[%c7, %c0_28, %c0_29], %52 {strides = array<i32>} : memref<8x8x8xbf16, #tpu.memory_space<vmem>>, vector<1x8x8xbf16>,
    %c0_i32 = arith.constant 0 : i32
    %53 = arith.cmpi eq, %arg0, %c0_i32 : i32
    %54 = arith.extui %53 : i1 to i32
    %c0_i32_30 = arith.constant 0 : i32
    %55 = arith.cmpi ne, %54, %c0_i32_30 : i32
    scf.if %55 {
      %c0_31 = arith.constant 0 : index
      %c0_32 = arith.constant 0 : index
      %56 = vector.load %arg4[%c0_31, %c0_32] : memref<8x8xbf16, #tpu.memory_space<vmem>>, vector<8x8xbf16>
      %c7_33 = arith.constant 7 : index
      %c0_34 = arith.constant 0 : index
      %c0_35 = arith.constant 0 : index
      %57 = vector.load %arg5[%c7_33, %c0_34, %c0_35] : memref<8x8x8xbf16, #tpu.memory_space<vmem>>, vector<1x8x8xbf16>
      %58 = vector.shape_cast %57 : vector<1x8x8xbf16> to vector<8x8xbf16>
      %59 = vector.shape_cast %56 : vector<8x8xbf16> to vector<1x8x8xbf16>
      tpu.vector_store %arg5[%c7_33, %c0_34, %c0_35], %59 {strides = array<i32>} : memref<8x8x8xbf16, #tpu.memory_space<vmem>>, vector<1x8x8xbf16>,
    } else {
    }
    return
  }
  func.func @transform_0(%arg0: i32) -> (i32, i32) {
    %c0_i32 = arith.constant 0 : i32
    %c0_i32_0 = arith.constant 0 : i32
    return %arg0, %c0_i32 : i32, i32
  }
  func.func @transform_1(%arg0: i32) -> (i32, i32) {
    %c0_i32 = arith.constant 0 : i32
    %c0_i32_0 = arith.constant 0 : i32
    %c0_i32_1 = arith.constant 0 : i32
    return %c0_i32, %c0_i32_0 : i32, i32
  }
  func.func @transform_2(%arg0: i32) -> (i32, i32) {
    %c0_i32 = arith.constant 0 : i32
    %c0_i32_0 = arith.constant 0 : i32
    %c0_i32_1 = arith.constant 0 : i32
    return %c0_i32, %c0_i32_0 : i32, i32
  }
  func.func @transform_3(%arg0: i32) -> (i32, i32) {
    %c0_i32 = arith.constant 0 : i32
    %c0_i32_0 = arith.constant 0 : i32
    %c0_i32_1 = arith.constant 0 : i32
    return %c0_i32, %c0_i32_0 : i32, i32
  }
  func.func @transform_4(%arg0: i32) -> (i32, i32, i32) {
    %c0_i32 = arith.constant 0 : i32
    %c0_i32_0 = arith.constant 0 : i32
    %c0_i32_1 = arith.constant 0 : i32
    return %arg0, %c0_i32, %c0_i32_0 : i32, i32, i32
  }
}

module attributes {stable_mosaic.version = 11 : i64} {
  func.func @_cost_kernel(%arg0: i32, %arg1: memref<8x64xbf16, #tpu.memory_space<vmem>>, %arg2: memref<128x64xbf16, #tpu.memory_space<vmem>>, %arg3: memref<1x128xf32, #tpu.memory_space<vmem>>, %arg4: memref<8x128xf32, #tpu.memory_space<vmem>>) attributes {dimension_semantics = [#tpu.dimension_semantics<parallel>], iteration_bounds = array<i64: 1>, scalar_prefetch = 0 : i64, scratch_operands = 0 : i64, tpu.core_type = #tpu.core_type<tc>, window_params = [{transform_indices = @transform_0, window_bounds = array<i64: 8, 64>}, {pipeline_mode = #tpu.pipeline_mode<synchronous>, transform_indices = @transform_1, window_bounds = array<i64: 128, 64>}, {pipeline_mode = #tpu.pipeline_mode<synchronous>, transform_indices = @transform_2, window_bounds = array<i64: 1, 128>}, {transform_indices = @transform_3, window_bounds = array<i64: 8, 128>}]} {
    %c0 = arith.constant 0 : index
    %c0_0 = arith.constant 0 : index
    %0 = vector.load %arg1[%c0, %c0_0] : memref<8x64xbf16, #tpu.memory_space<vmem>>, vector<8x64xbf16>
    %c0_1 = arith.constant 0 : index
    %c0_2 = arith.constant 0 : index
    %1 = vector.load %arg2[%c0_1, %c0_2] : memref<128x64xbf16, #tpu.memory_space<vmem>>, vector<128x64xbf16>
    %cst = arith.constant dense<0.000000e+00> : vector<8x128xf32>
    %2 = tpu.matmul %0, %1, %cst {dimension_numbers = #tpu.dot_dimension_numbers<[1], [1], [0], [0], [0, 0, 1, 0], [], []>} : vector<8x64xbf16>, vector<128x64xbf16>, vector<8x128xf32> -> vector<8x128xf32>
    %3 = vector.extract_strided_slice %2 {offsets = [0, 7], sizes = [8, 1], strides = [1, 1]} : vector<8x128xf32> to vector<8x1xf32>
    %cst_3 = arith.constant 1.000000e+00 : bf16
    %4 = vector.broadcast %cst_3 : bf16 to vector<1x64xbf16>
    %cst_4 = arith.constant dense<0.000000e+00> : vector<1x128xf32>
    %5 = tpu.matmul %4, %1, %cst_4 {dimension_numbers = #tpu.dot_dimension_numbers<[1], [1], [0], [0], [0, 0, 1, 0], [], []>} : vector<1x64xbf16>, vector<128x64xbf16>, vector<1x128xf32> -> vector<1x128xf32>
    %cst_5 = arith.constant 2.000000e+00 : f32
    %6 = vector.broadcast %cst_5 : f32 to vector<8x128xf32>
    %7 = arith.mulf %6, %2 : vector<8x128xf32>
    %cst_6 = arith.constant 1.000000e+00 : f32
    %8 = vector.broadcast %cst_6 : f32 to vector<8x128xf32>
    %9 = arith.addf %7, %8 : vector<8x128xf32>
    %10 = vector.broadcast %3 : vector<8x1xf32> to vector<8x128xf32>
    %11 = vector.broadcast %5 : vector<1x128xf32> to vector<8x128xf32>
    %12 = arith.addf %10, %11 : vector<8x128xf32>
    %cst_7 = arith.constant 1.000000e+00 : f32
    %13 = vector.broadcast %cst_7 : f32 to vector<8x128xf32>
    %14 = arith.addf %12, %13 : vector<8x128xf32>
    %15 = arith.divf %9, %14 : vector<8x128xf32>
    %cst_8 = arith.constant 1.000000e+00 : f32
    %16 = vector.broadcast %cst_8 : f32 to vector<8x128xf32>
    %17 = arith.subf %16, %15 : vector<8x128xf32>
    %c0_9 = arith.constant 0 : index
    %c0_10 = arith.constant 0 : index
    %18 = vector.load %arg3[%c0_9, %c0_10] : memref<1x128xf32, #tpu.memory_space<vmem>>, vector<1x128xf32>
    %cst_11 = arith.constant 0.000000e+00 : f32
    %19 = vector.broadcast %cst_11 : f32 to vector<1x128xf32>
    %20 = arith.cmpf ogt, %18, %19 : vector<1x128xf32>
    %cst_12 = arith.constant 1.000000e+00 : f32
    %21 = vector.shape_cast %20 : vector<1x128xi1> to vector<1x128xi1>
    %22 = vector.broadcast %21 : vector<1x128xi1> to vector<8x128xi1>
    %23 = vector.broadcast %cst_12 : f32 to vector<8x128xf32>
    %24 = arith.select %22, %17, %23 : vector<8x128xi1>, vector<8x128xf32>
    %c0_13 = arith.constant 0 : index
    %c0_14 = arith.constant 0 : index
    %25 = vector.load %arg4[%c0_13, %c0_14] : memref<8x128xf32, #tpu.memory_space<vmem>>, vector<8x128xf32>
    tpu.vector_store %arg4[%c0_13, %c0_14], %24 {strides = array<i32>} : memref<8x128xf32, #tpu.memory_space<vmem>>, vector<8x128xf32>,
    return
  }
  func.func @transform_0(%arg0: i32) -> (i32, i32) {
    %c0_i32 = arith.constant 0 : i32
    %c0_i32_0 = arith.constant 0 : i32
    return %arg0, %c0_i32 : i32, i32
  }
  func.func @transform_1(%arg0: i32) -> (i32, i32) {
    %c0_i32 = arith.constant 0 : i32
    %c0_i32_0 = arith.constant 0 : i32
    %c0_i32_1 = arith.constant 0 : i32
    return %c0_i32, %c0_i32_0 : i32, i32
  }
  func.func @transform_2(%arg0: i32) -> (i32, i32) {
    %c0_i32 = arith.constant 0 : i32
    %c0_i32_0 = arith.constant 0 : i32
    %c0_i32_1 = arith.constant 0 : i32
    return %c0_i32, %c0_i32_0 : i32, i32
  }
  func.func @transform_3(%arg0: i32) -> (i32, i32) {
    %c0_i32 = arith.constant 0 : i32
    %c0_i32_0 = arith.constant 0 : i32
    return %arg0, %c0_i32 : i32, i32
  }
}

</mosaic_0001>

<bundles_post_ra>
// kernel: _prematch_cost.2
= control target key start
LH: loop header
LB: loop body
LE: loop exit
PB: predicated region body
PF: predicated region fallthrough
CT: control target
= control target key end

     0   :  { %vm82_vm0 = vcmask 130048   ;;  %v705_v9 = vmov 0.0   ;;  %vm706_vm1 = vmmov 0   ;;  %vm257_vm2 = vcmask 60416   ;;  %s825_s2 = inlined_call_operand.vmem [shape: bf16[16,8], index: 2, kind: input, shape index: {}]   ;;  %s826_s0 = inlined_call_operand.vmem [shape: bf16[128,16], index: 0, kind: input, shape index: {}]   ;;  %s827_s1 = inlined_call_operand.vmem [shape: bf16[8,16], index: 1, kind: input, shape index: {}]   ;;  %s828_s4 = inlined_call_operand.vmem [shape: bf16[128,8,8], index: 4, kind: output, shape index: {}]   ;;  %s829_s3 = inlined_call_operand.vmem [shape: bf16[8,8], index: 3, kind: input, shape index: {}]  }
   0x1   :  { %v696_v0 = vld [vmem:[%s825_s2] sm:$0xff]   ;;  %v698_v2 = vld [vmem:[%s826_s0 + $0x8] sm:$0xff]   ;;  %v699_v3 = vld [vmem:[%s826_s0 + $0x10] sm:$0xff]   ;;  %646 = vmatprep.subr.bf16.mxu1 %v705_v9  ;;  %648 = vmatprep.mubr.msk.bf16.mxu1 %vm706_vm1, %v705_v9 }
   0x2   :  { %v697_v1 = vld [vmem:[%s826_s0] sm:$0xff]   ;;  %628 = vmatprep.subr.bf16.mxu0 %v696_v0  ;;  %v700_v4 = vld [vmem:[%s826_s0 + $0x18] sm:$0xff]   ;;  %v702_v6 = vld [vmem:[%s826_s0 + $0x28] sm:$0xff]  }
   0x3   :  { %629 = vmatpush3.bf16.msra.mxu0 %v696_v0  ;;  %630 = vmatprep.mubr.msk.bf16.mxu0 %vm82_vm0, %v697_v1  ;;  %v701_v5 = vld [vmem:[%s826_s0 + $0x20] sm:$0xff]   ;;  %v703_v7 = vld [vmem:[%s826_s0 + $0x30] sm:$0xff]   ;;  %v704_v8 = vld [vmem:[%s826_s0 + $0x38] sm:$0xff]  }
   0x4   :  { %670 = vmatprep.subr.bf16.mxu0 %v705_v9  ;;  %v212_v16 = vld [vmem:[%s827_s1] sm:$0xf] }
   0x6   :  { %631 = vmatmul.mubr.msk.bf16.vlgmr.msra.gmra.mrb[0].mxu0 %vm82_vm0, %v698_v2 }
   0x7   :  { %634 = vmatprep.mubr.msk.bf16.mxu0 %vm82_vm0, %v699_v3 }
   0xe   :  { %635 = vmatmul.mubr.msk.bf16.gmra.mrb[4].mxu0 %vm82_vm0, %v700_v4 }
   0xf   :  { %638 = vmatprep.mubr.msk.bf16.mxu0 %vm82_vm0, %v701_v5 }
  0x16   :  { %639 = vmatmul.mubr.msk.bf16.gmra.mrb[8].mxu0 %vm82_vm0, %v702_v6 }
  0x17   :  { %642 = vmatprep.mubr.msk.bf16.mxu0 %vm82_vm0, %v703_v7 }
  0x1e   :  { %643 = vmatmul.mubr.msk.bf16.gmra.mrb[12].mxu0 %vm82_vm0, %v704_v8  ;;  %v564_v8 = vld [vmem:[%s829_s3] sm:$0xf] }
  0x1f   :  { %672 = vmatprep.mubr.msk.bf16.mxu0 %vm706_vm1, %v705_v9 }
  0xd9   :  { %v632_v10 = vpop.f32.mrb[0].mxu0 }
  0xda   :  { %v141_v11 = vpop.f32.mrb[1].mxu0 }
  0xdb   :  { %v633_v12 = vpop.f32.mrb[2].mxu0 }
  0xdc   :  { %v205_v13 = vpack.c.bf16 %v633_v12, %v632_v10  ;;  %v144_v14 = vpop.f32.mrb[3].mxu0 }
  0xdd   :  { %v204_v15 = vpack.c.bf16 %v144_v14, %v141_v11 }
  0xdf   :  { %647 = vmatpush3.bf16.msra.mxu1 %v204_v15 }
  0xe0   :  { %652 = vmatprep.subr.bf16.mxu1 %v705_v9 }
  0xe1   :  { %v636_v17 = vpop.f32.mrb[4].mxu0 }
  0xe2   :  { %v157_v18 = vpop.f32.mrb[5].mxu0  ;;  %649 = vmatmul.mubr.msk.bf16.vlgmr.msra.gmra.mrb[0].mxu1 %vm82_vm0, %v212_v16 }
  0xe3   :  { %v637_v19 = vpop.f32.mrb[6].mxu0  ;;  %653 = vmatpush3.bf16.msra.mxu1 %v205_v13  ;;  %654 = vmatprep.mubr.msk.bf16.mxu1 %vm706_vm1, %v705_v9 }
  0xe4   :  { %v207_v20 = vpack.c.bf16 %v637_v19, %v636_v17  ;;  %v160_v21 = vpop.f32.mrb[7].mxu0  ;;  %658 = vmatprep.subr.bf16.mxu1 %v705_v9 }
  0xe5   :  { %v206_v22 = vpack.c.bf16 %v160_v21, %v157_v18 }
  0xe9   :  { %v640_v23 = vpop.f32.mrb[8].mxu0 }
  0xea   :  { %v173_v24 = vpop.f32.mrb[9].mxu0  ;;  %655 = vmatmul.mubr.msk.bf16.vlgmr.msra.gmra.mrb[4].mxu1 %vm82_vm0, %v212_v16 }
  0xeb   :  { %659 = vmatpush3.bf16.msra.mxu1 %v206_v22  ;;  %v641_v25 = vpop.f32.mrb[10].mxu0  ;;  %660 = vmatprep.mubr.msk.bf16.mxu1 %vm706_vm1, %v705_v9 }
  0xec   :  { %v209_v26 = vpack.c.bf16 %v641_v25, %v640_v23  ;;  %v176_v27 = vpop.f32.mrb[11].mxu0  ;;  %664 = vmatprep.subr.bf16.mxu1 %v705_v9 }
  0xed   :  { %v208_v28 = vpack.c.bf16 %v176_v27, %v173_v24 }
  0xef   :  { %671 = vmatpush3.bf16.msra.mxu0 %v208_v28 }
  0xf0   :  { %682 = vmatprep.subr.bf16.mxu0 %v705_v9 }
  0xf1   :  { %v644_v29 = vpop.f32.mrb[12].mxu0 }
  0xf2   :  { %661 = vmatmul.mubr.msk.bf16.vlgmr.msra.gmra.mrb[8].mxu1 %vm82_vm0, %v212_v16  ;;  %v189_v30 = vpop.f32.mrb[13].mxu0  ;;  %673 = vmatmul.mubr.msk.bf16.vlgmr.msra.gmra.mrb[16].mxu0 %vm82_vm0, %v212_v16 }
  0xf3   :  { %665 = vmatpush3.bf16.msra.mxu1 %v207_v20  ;;  %666 = vmatprep.mubr.msk.bf16.mxu1 %vm706_vm1, %v705_v9  ;;  %v645_v31 = vpop.f32.mrb[14].mxu0 }
  0xf4   :  { %676 = vmatprep.subr.bf16.mxu1 %v705_v9  ;;  %v211_v32 = vpack.c.bf16 %v645_v31, %v644_v29  ;;  %v192_v33 = vpop.f32.mrb[15].mxu0  ;;  %684 = vmatprep.mubr.msk.bf16.mxu0 %vm706_vm1, %v705_v9 }
  0xf5   :  { %v210_v34 = vpack.c.bf16 %v192_v33, %v189_v30 }
  0xf7   :  { %683 = vmatpush3.bf16.msra.mxu0 %v210_v34 }
  0xfa   :  { %667 = vmatmul.mubr.msk.bf16.vlgmr.msra.gmra.mrb[12].mxu1 %vm82_vm0, %v212_v16  ;;  %685 = vmatmul.mubr.msk.bf16.vlgmr.msra.gmra.mrb[20].mxu0 %vm82_vm0, %v212_v16 }
  0xfb   :  { %677 = vmatpush3.bf16.msra.mxu1 %v209_v26  ;;  %678 = vmatprep.mubr.msk.bf16.mxu1 %vm706_vm1, %v705_v9 }
  0xfc   :  { %688 = vmatprep.subr.bf16.mxu1 %v705_v9 }
 0x102   :  { %679 = vmatmul.mubr.msk.bf16.vlgmr.msra.gmra.mrb[16].mxu1 %vm82_vm0, %v212_v16 }
 0x103   :  { %689 = vmatpush3.bf16.msra.mxu1 %v211_v32  ;;  %690 = vmatprep.mubr.msk.bf16.mxu1 %vm706_vm1, %v705_v9 }
 0x10a   :  { %691 = vmatmul.mubr.msk.bf16.vlgmr.msra.gmra.mrb[20].mxu1 %vm82_vm0, %v212_v16 }
 0x1b5   :  { %v250_v35 = vpop.f32.mrb[0].mxu1 }
 0x1b6   :  { %v256_v36 = vpack.c.bf16 %v250_v35, %v250_v35  ;;  %v650_v37 = vpop.f32.mrb[1].mxu1 }
 0x1b7   :  { %v253_v38 = vpop.f32.mrb[2].mxu1 }
 0x1b8   :  { %258 = vst.msk [vmem:[%s828_s4] sm:$0xf] %vm257_vm2, %v256_v36  ;;  %v651_v39 = vpop.f32.mrb[3].mxu1 }
 0x1bd   :  { %v293_v40 = vpop.f32.mrb[4].mxu1 }
 0x1be   :  { %v299_v41 = vpack.c.bf16 %v293_v40, %v293_v40  ;;  %v656_v42 = vpop.f32.mrb[5].mxu1 }
 0x1bf   :  { %v296_v43 = vpop.f32.mrb[6].mxu1 }
 0x1c0   :  { %589 = vst.msk [vmem:[%s828_s4 + $0x4] sm:$0xf] %vm257_vm2, %v299_v41  ;;  %v657_v44 = vpop.f32.mrb[7].mxu1 }
 0x1c5   :  { %v336_v45 = vpop.f32.mrb[8].mxu1  ;;  %v422_v46 = vpop.f32.mrb[16].mxu0 }
 0x1c6   :  { %v342_v47 = vpack.c.bf16 %v336_v45, %v336_v45  ;;  %v662_v48 = vpop.f32.mrb[9].mxu1  ;;  %v428_v49 = vpack.c.bf16 %v422_v46, %v422_v46  ;;  %v674_v50 = vpop.f32.mrb[17].mxu0 }
 0x1c7   :  { %v339_v51 = vpop.f32.mrb[10].mxu1  ;;  %v425_v52 = vpop.f32.mrb[18].mxu0 }
 0x1c8   :  { %591 = vst.msk [vmem:[%s828_s4 + $0x8] sm:$0xf] %vm257_vm2, %v342_v47  ;;  %v663_v53 = vpop.f32.mrb[11].mxu1  ;;  %595 = vst.msk [vmem:[%s828_s4 + $0x10] sm:$0xf] %vm257_vm2, %v428_v49  ;;  %v675_v54 = vpop.f32.mrb[19].mxu0 }
 0x1cd   :  { %v379_v55 = vpop.f32.mrb[12].mxu1  ;;  %v508_v56 = vpop.f32.mrb[20].mxu0 }
 0x1ce   :  { %v385_v57 = vpack.c.bf16 %v379_v55, %v379_v55  ;;  %v668_v58 = vpop.f32.mrb[13].mxu1  ;;  %v514_v59 = vpack.c.bf16 %v508_v56, %v508_v56  ;;  %v686_v60 = vpop.f32.mrb[21].mxu0 }
 0x1cf   :  { %v382_v61 = vpop.f32.mrb[14].mxu1  ;;  %v511_v62 = vpop.f32.mrb[22].mxu0 }
 0x1d0   :  { %593 = vst.msk [vmem:[%s828_s4 + $0xc] sm:$0xf] %vm257_vm2, %v385_v57  ;;  %v669_v63 = vpop.f32.mrb[15].mxu1  ;;  %599 = vst.msk [vmem:[%s828_s4 + $0x18] sm:$0xf] %vm257_vm2, %v514_v59  ;;  %v687_v0 = vpop.f32.mrb[23].mxu0 }
 0x1d5   :  { %v465_v1 = vpop.f32.mrb[16].mxu1 }
 0x1d6   :  { %v471_v2 = vpack.c.bf16 %v465_v1, %v465_v1  ;;  %v680_v3 = vpop.f32.mrb[17].mxu1 }
 0x1d7   :  { %v468_v4 = vpop.f32.mrb[18].mxu1 }
 0x1d8   :  { %597 = vst.msk [vmem:[%s828_s4 + $0x14] sm:$0xf] %vm257_vm2, %v471_v2  ;;  %v681_v5 = vpop.f32.mrb[19].mxu1 }
 0x1dd   :  { %v551_v6 = vpop.f32.mrb[20].mxu1 }
 0x1de   :  { %v557_v7 = vpack.c.bf16 %v551_v6, %v551_v6  ;;  %v692_v9 = vpop.f32.mrb[21].mxu1 }
 0x1df   :  { %v554_v10 = vpop.f32.mrb[22].mxu1 }
 0x1e0   :  { %601 = vst.msk [vmem:[%s828_s4 + $0x1c] sm:$0xf] %vm257_vm2, %v557_v7  ;;  %v693_v11 = vpop.f32.mrb[23].mxu1 }
 0x1e1   :  { %602 = vst.msk [vmem:[%s828_s4 + $0x1c] sm:$0xf] %vm257_vm2, %v564_v8 }

// kernel: _prematch_cost.3
= control target key start
LH: loop header
LB: loop body
LE: loop exit
PB: predicated region body
PF: predicated region fallthrough
CT: control target
= control target key end

     0   :  { %v334_v1 = vmov 0.0   ;;  %vm74_vm0 = vcmask 523264   ;;  %vm335_vm1 = vmmov 0   ;;  %s412_s0 = inlined_call_operand.vmem [shape: bf16[8,64], index: 0, kind: input, shape index: {}]   ;;  %s413_s1 = inlined_call_operand.vmem [shape: bf16[128,64], index: 1, kind: input, shape index: {}]   ;;  %s414_s2 = inlined_call_operand.vmem [shape: f32[1,128], index: 2, kind: input, shape index: {}]   ;;  %s415_s3 = inlined_call_operand.hbm [shape: f32[8,128], index: 3, kind: output, shape index: {}]  }
   0x1   :  { %v300_v0 = vld [vmem:[%s413_s1] sm:$0xff]   ;;  %253 = vmatprep.subr.bf16.mxu0 %v334_v1  ;;  %273 = vmatprep.subr.bf16.mxu1 %v334_v1  ;;  %v301_v3 = vld [vmem:[%s413_s1 + $0x8] sm:$0xff]  }
   0x2   :  { %v79_v2 = vsel %vm74_vm0, %v300_v0, 0  ;;  %v82_v4 = vsel %vm74_vm0, %v301_v3, 0  ;;  %269 = vmatprep.mubr.msk.bf16.mxu0 %vm335_vm1, %v334_v1  ;;  %289 = vmatprep.mubr.msk.bf16.mxu1 %vm335_vm1, %v334_v1 }
   0x3   :  { %254 = vmatpush3.bf16.xpose.msra.mxu0 %v79_v2  ;;  %274 = vmatpush3.bf16.xpose.msra.mxu1 %v79_v2 }
   0x4   :  { %255 = vmatprep.subr.bf16.mxu0 %v334_v1  ;;  %275 = vmatprep.subr.bf16.mxu1 %v334_v1 }
   0x5   :  { %8 = vsyncpa [#allocation3], 0  ;;  %v336_v5 = vmov 7   ;;  %v302_v6 = vld [vmem:[%s413_s1 + $0x10] sm:$0xff]   ;;  %v303_v8 = vld [vmem:[%s413_s1 + $0x18] sm:$0xff]   ;;  %v192_v28 = vlaneseq  ;;  %v338_v37 = vmov 0  }
   0x6   :  { %299 = vset.pattern.permute.xlu0 %v336_v5  ;;  %v85_v7 = vsel %vm74_vm0, %v302_v6, 0  ;;  %v88_v9 = vsel %vm74_vm0, %v303_v8, 0  ;;  %v304_v10 = vld [vmem:[%s413_s1 + $0x20] sm:$0xff]   ;;  %v305_v12 = vld [vmem:[%s413_s1 + $0x28] sm:$0xff]   ;;  %v306_v14 = vld [vmem:[%s413_s1 + $0x30] sm:$0xff]   ;;  %s339_s30 = smov [#allocation2]  }
   0x7   :  { %v91_v11 = vsel %vm74_vm0, %v304_v10, 0  ;;  %v94_v13 = vsel %vm74_vm0, %v305_v12, 0  ;;  %v97_v15 = vsel %vm74_vm0, %v306_v14, 0  ;;  %v307_v16 = vld [vmem:[%s413_s1 + $0x38] sm:$0xff]   ;;  %v17_v18 = vld [vmem:[%s412_s0] sm:$0xf] }
   0x8   :  { %v100_v17 = vsel %vm74_vm0, %v307_v16, 0  ;;  %v337_v19 = vmov 1065369472   ;;  %v193_v29 = vshrl.u32 %v192_v28, 7  ;;  %v201_v35 = vld [vmem:[%s414_s2] sm:$0x1] }
   0x9   :  { %vm202_vm2 = vcmp.gt.f32.partialorder %v201_v35, 0.0  ;;  %s217_s4 = sshll.u32 %s339_s30, 4  ;;  %s218_s4 = int_to_ptr.vmem [resolvable:$true] %s217_s4 }
   0xa   :  { %v194_v30 = vsub.s32 0, %v193_v29  ;;  %v203_v38 = vsel %vm202_vm2, 1, %v338_v37  ;;  %s310_s5 = scalar_lea.vmem %s218_s4, 128  ;;  %p315_p1 = scmp.lt.s32.totalorder %s218_s4, %s218_s4 }
   0xb   :  { %256 = vmatpush3.bf16.xpose.msra.mxu0 %v82_v4  ;;  %276 = vmatpush3.bf16.xpose.msra.mxu1 %v82_v4  ;;  %p311_p0 = scmp.ne.s32.totalorder %s218_s4, %s310_s5  ;;  %p316_p2 = scmp.lt.s32.totalorder %s310_s5, %s310_s5 }
   0xc   :  { %257 = vmatprep.subr.bf16.mxu0 %v334_v1  ;;  %277 = vmatprep.subr.bf16.mxu1 %v334_v1  ;;  %v207_v39 = vrot.slane %v203_v38, %v194_v30 }
   0xd   :  { %p317_p3 = por %p316_p2, %p315_p1 }
   0xe   :  { %vm208_vm3 = vcmp.eq.s32.totalorder %v207_v39, 1 }
   0xf   :  { %p318_p4 = pnand %p317_p3, %p311_p0 }
  0x13   :  { %258 = vmatpush3.bf16.xpose.msra.mxu0 %v85_v7  ;;  %278 = vmatpush3.bf16.xpose.msra.mxu1 %v85_v7 }
  0x14   :  { %259 = vmatprep.subr.bf16.mxu0 %v334_v1  ;;  %279 = vmatprep.subr.bf16.mxu1 %v334_v1 }
  0x1b   :  { %260 = vmatpush3.bf16.xpose.msra.mxu0 %v88_v9  ;;  %280 = vmatpush3.bf16.xpose.msra.mxu1 %v88_v9 }
  0x1c   :  { %261 = vmatprep.subr.bf16.mxu0 %v334_v1  ;;  %281 = vmatprep.subr.bf16.mxu1 %v334_v1 }
  0x23   :  { %262 = vmatpush3.bf16.xpose.msra.mxu0 %v91_v11  ;;  %282 = vmatpush3.bf16.xpose.msra.mxu1 %v91_v11 }
  0x24   :  { %263 = vmatprep.subr.bf16.mxu0 %v334_v1  ;;  %283 = vmatprep.subr.bf16.mxu1 %v334_v1 }
  0x2b   :  { %264 = vmatpush3.bf16.xpose.msra.mxu0 %v94_v13  ;;  %284 = vmatpush3.bf16.xpose.msra.mxu1 %v94_v13 }
  0x2c   :  { %265 = vmatprep.subr.bf16.mxu0 %v334_v1  ;;  %285 = vmatprep.subr.bf16.mxu1 %v334_v1 }
  0x33   :  { %266 = vmatpush3.bf16.xpose.msra.mxu0 %v97_v15  ;;  %286 = vmatpush3.bf16.xpose.msra.mxu1 %v97_v15 }
  0x34   :  { %267 = vmatprep.subr.bf16.mxu0 %v334_v1  ;;  %287 = vmatprep.subr.bf16.mxu1 %v334_v1 }
  0x3b   :  { %268 = vmatpush3.bf16.xpose.msra.mxu0 %v100_v17  ;;  %288 = vmatpush3.bf16.xpose.msra.mxu1 %v100_v17 }
  0x42   :  { %270 = vmatmul.mubr.msk.bf16.vlgmr.msra.gmra.mrb[0].mxu0 %vm74_vm0, %v17_v18  ;;  %290 = vmatmul.mubr.msk.bf16.vlgmr.msra.gmra.mrb[0].mxu1 %vm74_vm0, %v337_v19 }
 0x115   :  { %v136_v20 = vpop.f32.mrb[0].mxu0  ;;  %v179_v21 = vpop.f32.mrb[0].mxu1 }
 0x116   :  { %189 = vperm.xlu0 %299, %v136_v20   ;;  %v271_v22 = vpop.f32.mrb[1].mxu0  ;;  %v291_v23 = vpop.f32.mrb[1].mxu1  ;;  %v195_v31 = vrot.slane %v179_v21, %v194_v30  ;;  %v185_v36 = vmul.f32 2.0, %v136_v20 }
 0x117   :  { %v139_v24 = vpop.f32.mrb[2].mxu0  ;;  %v182_v25 = vpop.f32.mrb[2].mxu1 }
 0x118   :  { %v272_v26 = vpop.f32.mrb[3].mxu0  ;;  %v292_v27 = vpop.f32.mrb[3].mxu1  ;;  %v186_v40 = vadd.f32 1.0, %v185_v36 }
 0x195   :  { %v190_v32 = vpop.permute.xlu0 %189 }
 0x196   :  { %v196_v33 = vadd.f32 %v195_v31, %v190_v32 }
 0x198   :  { %v197_v34 = vadd.f32 1.0, %v196_v33 }
 0x19a   :  { %308 = vrcp.f32 %v197_v34 }
 0x1a4   :  { %v309_v41 = vpop.eup %308 }
 0x1a5   :  { %v199_v42 = vmul.f32 %v309_v41, %v186_v40 }
 0x1a7   :  { %v200_v43 = vsub.f32 1.0, %v199_v42 }
 0x1a9   :  { %v209_v44 = vsel %vm208_vm3, %v200_v43, 1.0 }
 0x1aa   :  { %210 = vst [vmem:[#allocation2] sm:$0xff] %v209_v44 }
 0x1ab   :  { %321 = shalt.err (!%p318_p4)
}
 0x1ac   :  { %s322_s7 = scalar_lea.hbm %s415_s3, 128 }
 0x1ad   :  { %p323_p5 = scmp.ne.s32.totalorder %s415_s3, %s322_s7  ;;  %p326_p6 = scmp.lt.u32.totalorder %s322_s7, %s415_s3 }
 0x1af   :  { %p328_p7 = pnand %p326_p6, %p323_p5 }
 0x1b1   :  { %331 = shalt.err (!%p328_p7)
}
 0x1b2   :  { %220 = dma.vmem_to_hbm [thread:$0]  %s218_s4, 128, %s415_s3, [#allocation3]  }
 0x1b3   :  { %332 = dma.done.wait [#allocation3], 128  }
 0x1b4   :  { %333 = vsyncadd [#allocation3], 4294967168 }
 0x1b5   :  { %224 = vsyncpa [#allocation3], 1 }

</bundles_post_ra>
